<compile_context>
chip_gen: v6e
topology: v6e:2x2x1
jax: 0.10.0
libtpu: 0.0.40
codegen_flags: <defaults>
</compile_context>

<pallas_src>
from typing import NamedTuple, Optional

import jax
import jax.numpy as jnp
from jax.experimental import pallas as pl
from jax.experimental.pallas import tpu as pltpu


# --------------------------------------------------------------------------- #
# Helpers
# --------------------------------------------------------------------------- #
def _round_up(x, m):
    return ((x + m - 1) // m) * m


def _m_align(dtype) -> int:
    size = jnp.dtype(dtype).itemsize
    if size >= 4:
        return 8
    if size == 2:
        return 16
    return 32


def _hw_config():
    """Best-effort hardware query; conservative fallbacks if unavailable."""
    kind = ""
    try:
        kind = jax.devices()[0].device_kind.lower()
    except Exception:
        pass
    is_v7 = "v7" in kind
    is_v6 = "v6" in kind
    vmem_phys = 0
    try:
        vmem_phys = int(pltpu.get_tpu_info().vmem_capacity_bytes)
    except Exception:
        vmem_phys = 0
    if not vmem_phys:
        vmem_phys = (64 << 20) if is_v7 else (128 << 20)
    return is_v7, is_v6, vmem_phys


def _vmem_estimate(tm, th, e_pad, dt_x, dt_w, dt_o, multi_h):
    """Per-grid-step VMEM working set (double-buffered pipelined operands)."""
    x_buf = 2 * tm * e_pad * dt_x
    o_buf = 2 * tm * e_pad * dt_o
    acc = tm * e_pad * 4 if multi_h else 0
    w13 = 2 * e_pad * (2 * th) * dt_w        # fused gate/up block
    w2 = 2 * th * e_pad * dt_w               # down-proj block
    bias = 2 * (2 * th + e_pad) * dt_w
    return x_buf + o_buf + acc + w13 + w2 + bias


# --------------------------------------------------------------------------- #
# Kernels
# --------------------------------------------------------------------------- #
def _glu_ffn_kernel_multi(x_ref, w13_ref, b13_ref, w2_ref, b2_ref, o_ref,
                          acc_ref):
    """grid = (M_tiles, H_tiles); H axis is a reduction into acc_ref."""
    h_idx = pl.program_id(1)
    th = w2_ref.shape[0]

    @pl.when(h_idx == 0)
    def _():
        acc_ref[...] = jnp.zeros_like(acc_ref)

    x = x_ref[...]                                           # native dtype
    # Fused gate/up projection for this H block, f32 accumulation on the MXU.
    h13 = jnp.dot(x, w13_ref[...], preferred_element_type=jnp.float32)
    h13 = h13 + b13_ref[...].astype(jnp.float32)
    h1 = h13[:, :th]                                         # lane-aligned split
    h3 = h13[:, th:]

    # SiLU(h1) * h3 in f32 (dropout p=0.0 is identity).
    gated = (h1 * jax.nn.sigmoid(h1)) * h3

    # Down projection for this H block, accumulated into the resident output.
    acc_ref[...] += jnp.dot(gated.astype(w2_ref.dtype), w2_ref[...],
                            preferred_element_type=jnp.float32)

    @pl.when(h_idx == pl.num_programs(1) - 1)
    def _():
        o_ref[...] = (acc_ref[...] + b2_ref[...].astype(jnp.float32)
                      ).astype(o_ref.dtype)


def _glu_ffn_kernel_single(x_ref, w13_ref, b13_ref, w2_ref, b2_ref, o_ref):
    """Fast path for n_h == 1: no accumulator scratch, direct store."""
    th = w2_ref.shape[0]
    x = x_ref[...]
    h13 = jnp.dot(x, w13_ref[...], preferred_element_type=jnp.float32)
    h13 = h13 + b13_ref[...].astype(jnp.float32)
    h1 = h13[:, :th]
    h3 = h13[:, th:]
    gated = (h1 * jax.nn.sigmoid(h1)) * h3
    y = jnp.dot(gated.astype(w2_ref.dtype), w2_ref[...],
                preferred_element_type=jnp.float32)
    o_ref[...] = (y + b2_ref[...].astype(jnp.float32)).astype(o_ref.dtype)


# --------------------------------------------------------------------------- #
# Plan (computed once per layer configuration, not per call)
# --------------------------------------------------------------------------- #
class GLUFFNPlan(NamedTuple):
    E: int
    H: int
    E_pad: int
    H_pad: int
    th: int
    n_h: int
    tm: int              # target token tile
    m_align: int
    vmem_phys: int
    two_cores: bool


def make_glu_ffn_plan(E, H, x_dtype, w_dtype) -> GLUFFNPlan:
    dt_x = jnp.dtype(x_dtype).itemsize
    dt_w = jnp.dtype(w_dtype).itemsize
    is_v7, is_v6, vmem_phys = _hw_config()

    E_pad = _round_up(E, 128)

    # Generation-aware targets: weight HBM traffic is re-streamed once per
    # M tile, so arithmetic intensity on the weight stream ~= tm FLOPs/byte.
    if is_v7:
        tm_target, th_target = 384, 256      # 64 MiB VMEM / TC, 3.2 TB/s HBM
    elif is_v6:
        tm_target, th_target = 512, 512      # needs tm~512 to beat 1.4 TB/s
    else:                                    # v5e / unknown
        tm_target, th_target = 256, (512 if dt_w <= 2 else 256)

    budget = int(vmem_phys * 0.70)
    tm = tm_target
    th = min(th_target, _round_up(H, 128))
    while True:
        multi_h = th < _round_up(H, 128)
        if _vmem_estimate(tm, th, E_pad, dt_x, dt_w, dt_x, multi_h) <= budget:
            break
        if th > 128:
            th = max(128, _round_up(th // 2, 128))
        elif tm > 64:
            tm //= 2
        else:
            break

    H_pad = _round_up(H, th)                 # zero-padded hidden cols are inert
    n_h = H_pad // th
    return GLUFFNPlan(E=E, H=H, E_pad=E_pad, H_pad=H_pad, th=th, n_h=n_h,
                      tm=tm, m_align=_m_align(x_dtype), vmem_phys=vmem_phys,
                      two_cores=is_v7)


def prepare_glu_ffn_params(plan: GLUFFNPlan, w13, b13, w2, b2,
                           compute_dtype: Optional[jnp.dtype] = None):
    """Hoisted out of the hot path: transpose, pad, and fuse weights once."""
    if compute_dtype is not None:
        w13 = w13.astype(compute_dtype)
        b13 = b13.astype(compute_dtype)
        w2 = w2.astype(compute_dtype)
        b2 = b2.astype(compute_dtype)

    E, H, Ep, Hp, th = plan.E, plan.H, plan.E_pad, plan.H_pad, plan.th

    w1_t = jnp.pad(w13[:H, :].T, ((0, Ep - E), (0, Hp - H)))   # (Ep, Hp)
    w3_t = jnp.pad(w13[H:, :].T, ((0, Ep - E), (0, Hp - H)))   # (Ep, Hp)
    b1 = jnp.pad(b13[:H].reshape(1, H), ((0, 0), (0, Hp - H)))
    b3 = jnp.pad(b13[H:].reshape(1, H), ((0, 0), (0, Hp - H)))
    w2_t = jnp.pad(w2.T, ((0, Hp - H), (0, Ep - E)))           # (Hp, Ep)
    b2_2d = jnp.pad(b2.reshape(1, E), ((0, 0), (0, Ep - E)))   # (1, Ep)

    # Fuse gate/up block-wise so one DMA stream carries both per grid step:
    # for block h, columns [2*th*h, 2*th*h+th) = W1 block, next th = W3 block.
    n_h = plan.n_h

    def fuse(a, b):
        r = a.shape[0]
        ar = a.reshape(r, n_h, th)
        br = b.reshape(r, n_h, th)
        return jnp.concatenate([ar, br], axis=-1).reshape(r, 2 * Hp)

    w13_f = fuse(w1_t, w3_t)      # (Ep, 2*Hp)
    b13_f = fuse(b1, b3)          # (1, 2*Hp)
    return w13_f, b13_f, w2_t, b2_2d


# --------------------------------------------------------------------------- #
# Hot-path apply
# --------------------------------------------------------------------------- #
def glu_ffn_apply(plan: GLUFFNPlan, params, x):
    w13_f, b13_f, w2_t, b2_2d = params
    orig_shape = x.shape
    E, Ep, th, n_h = plan.E, plan.E_pad, plan.th, plan.n_h

    x2d = x.reshape(-1, E)
    M = x2d.shape[0]

    # --- Token (M) tiling: dtype-aware alignment, pad to a tile multiple. ---
    m_align = plan.m_align
    tm_eff = min(plan.tm, _round_up(M, m_align))
    # On dual-TC chips, ensure >= 2 M tiles so both TensorCores get work.
    if plan.two_cores and M <= tm_eff and M > m_align:
        tm_eff = _round_up((M + 1) // 2, m_align)
    M_pad = _round_up(M, tm_eff)

    if M_pad != M or Ep != E:
        x2d = jnp.pad(x2d, ((0, M_pad - M), (0, Ep - E)))

    grid = (M_pad // tm_eff, n_h)

    # --- Size the scoped VMEM limit to the real working set. ---
    dt_x = x2d.dtype.itemsize
    dt_w = w2_t.dtype.itemsize
    est = _vmem_estimate(tm_eff, th, Ep, dt_x, dt_w, dt_x, n_h > 1)
    vmem_limit = min(max(int(est * 1.25) + (2 << 20), 32 << 20),
                     int(plan.vmem_phys * 0.9))

    in_specs = [
        pl.BlockSpec((tm_eff, Ep), lambda i, h: (i, 0)),    # x tile
        pl.BlockSpec((Ep, 2 * th), lambda i, h: (0, h)),    # fused W1|W3 block
        pl.BlockSpec((1, 2 * th), lambda i, h: (0, h)),     # fused b1|b3 block
        pl.BlockSpec((th, Ep), lambda i, h: (h, 0)),        # W2^T block
        pl.BlockSpec((1, Ep), lambda i, h: (0, 0)),         # b2
    ]
    out_specs = pl.BlockSpec((tm_eff, Ep), lambda i, h: (i, 0))

    if n_h > 1:
        kernel = _glu_ffn_kernel_multi
        scratch = [pltpu.VMEM((tm_eff, Ep), jnp.float32)]
    else:
        kernel = _glu_ffn_kernel_single
        scratch = []

    out = pl.pallas_call(
        kernel,
        out_shape=jax.ShapeDtypeStruct((M_pad, Ep), x2d.dtype),
        grid_spec=pltpu.PrefetchScalarGridSpec(
            num_scalar_prefetch=0,
            grid=grid,
            in_specs=in_specs,
            out_specs=out_specs,
            scratch_shapes=scratch,
        ),
        compiler_params=pltpu.CompilerParams(
            dimension_semantics=("parallel", "arbitrary"),
            vmem_limit_bytes=vmem_limit,
        ),
    )(x2d, w13_f, b13_f, w2_t, b2_2d)

    out = out[:M, :E]
    return out.reshape(orig_shape)


def glu_ffn(x, w13, b13, w2, b2, *, compute_dtype=None):
    """Convenience one-shot wrapper (plan + prepare + apply).

    x   : (..., E)
    w13 : (2H, E)  torch nn.Linear layout (out, in)
    b13 : (2H,)
    w2  : (E, H)
    b2  : (E,)
    compute_dtype: optionally cast x / weights (e.g. jnp.bfloat16) for MXU
                   rate + bandwidth; accumulation stays f32 either way.
    """
    E = x.shape[-1]
    H = w2.shape[1]
    x_in = x if compute_dtype is None else x.astype(compute_dtype)
    w_dt = w2.dtype if compute_dtype is None else jnp.dtype(compute_dtype)
    plan = make_glu_ffn_plan(E, H, x_in.dtype, w_dt)
    params = prepare_glu_ffn_params(plan, w13, b13, w2, b2,
                                    compute_dtype=compute_dtype)
    return glu_ffn_apply(plan, params, x_in)


# --------------------------------------------------------------------------- #
# Reference & test
# --------------------------------------------------------------------------- #
def glu_ffn_ref(x, w13, b13, w2, b2):
    h = x @ w13.T + b13
    H = w2.shape[1]
    x1, x3 = h[..., :H], h[..., H:]
    return (jax.nn.silu(x1) * x3) @ w2.T + b2


if __name__ == "__main__":
    batch, seq, embedding_dim, hidden_dim = 2, 8, 32, 64

    key = jax.random.PRNGKey(0)
    kx, k1, k2, k3, k4 = jax.random.split(key, 5)

    x = jax.random.normal(kx, (batch, seq, embedding_dim), dtype=jnp.float32)
    # torch nn.Linear layouts: weight (out, in), bias (out,)
    w13 = jax.random.normal(k1, (2 * hidden_dim, embedding_dim), jnp.float32) * 0.05
    b13 = jax.random.normal(k2, (2 * hidden_dim,), jnp.float32) * 0.05
    w2 = jax.random.normal(k3, (embedding_dim, hidden_dim), jnp.float32) * 0.05
    b2 = jax.random.normal(k4, (embedding_dim,), jnp.float32) * 0.05

    # Hoisted flow: plan + parameter preparation once, apply per forward.
    plan = make_glu_ffn_plan(embedding_dim, hidden_dim, x.dtype, w2.dtype)
    params = prepare_glu_ffn_params(plan, w13, b13, w2, b2)
    y = glu_ffn_apply(plan, params, x)
    jax.block_until_ready(y)

    y_ref = glu_ffn_ref(x, w13, b13, w2, b2)
    assert y.shape == (batch, seq, embedding_dim)
    assert jnp.allclose(y, y_ref, atol=1e-3, rtol=1e-3), (
        "mismatch vs reference: max abs err "
        f"{float(jnp.max(jnp.abs(y - y_ref)))}")

    print("KERNEL_OK")
</pallas_src>

<mosaic_0001>
module attributes {stable_mosaic.version = 11 : i64} {
  func.func @_glu_ffn_kernel_single(%arg0: i32, %arg1: i32, %arg2: memref<16x128xf32, #tpu.memory_space<vmem>>, %arg3: memref<128x256xf32, #tpu.memory_space<vmem>>, %arg4: memref<1x256xf32, #tpu.memory_space<vmem>>, %arg5: memref<128x128xf32, #tpu.memory_space<vmem>>, %arg6: memref<1x128xf32, #tpu.memory_space<vmem>>, %arg7: memref<16x128xf32, #tpu.memory_space<vmem>>) attributes {dimension_semantics = [#tpu.dimension_semantics<parallel>, #tpu.dimension_semantics<arbitrary>], iteration_bounds = array<i64: 1, 1>, scalar_prefetch = 0 : i64, scratch_operands = 0 : i64, tpu.core_type = #tpu.core_type<tc>, window_params = [{transform_indices = @transform_0, window_bounds = array<i64: 16, 128>}, {transform_indices = @transform_1, window_bounds = array<i64: 128, 256>}, {transform_indices = @transform_2, window_bounds = array<i64: 1, 256>}, {transform_indices = @transform_3, window_bounds = array<i64: 128, 128>}, {pipeline_mode = #tpu.pipeline_mode<synchronous>, transform_indices = @transform_4, window_bounds = array<i64: 1, 128>}, {transform_indices = @transform_5, window_bounds = array<i64: 16, 128>}]} {
    %c0 = arith.constant 0 : index
    %c0_0 = arith.constant 0 : index
    %0 = vector.load %arg2[%c0, %c0_0] : memref<16x128xf32, #tpu.memory_space<vmem>>, vector<16x128xf32>
    %c0_1 = arith.constant 0 : index
    %c0_2 = arith.constant 0 : index
    %1 = vector.load %arg3[%c0_1, %c0_2] : memref<128x256xf32, #tpu.memory_space<vmem>>, vector<128x256xf32>
    %cst = arith.constant dense<0.000000e+00> : vector<16x256xf32>
    %2 = tpu.matmul %0, %1, %cst {dimension_numbers = #tpu.dot_dimension_numbers<[1], [0], [0], [1], [0, 0, 1, 1], [], []>} : vector<16x128xf32>, vector<128x256xf32>, vector<16x256xf32> -> vector<16x256xf32>
    %c0_3 = arith.constant 0 : index
    %c0_4 = arith.constant 0 : index
    %3 = vector.load %arg4[%c0_3, %c0_4] : memref<1x256xf32, #tpu.memory_space<vmem>>, vector<1x256xf32>
    %4 = vector.broadcast %3 : vector<1x256xf32> to vector<16x256xf32>
    %5 = arith.addf %2, %4 : vector<16x256xf32>
    %6 = vector.extract_strided_slice %5 {offsets = [0, 0], sizes = [16, 128], strides = [1, 1]} : vector<16x256xf32> to vector<16x128xf32>
    %7 = vector.extract_strided_slice %5 {offsets = [0, 128], sizes = [16, 128], strides = [1, 1]} : vector<16x256xf32> to vector<16x128xf32>
    %8 = arith.negf %6 : vector<16x128xf32>
    %9 = math.exp %8 : vector<16x128xf32>
    %cst_5 = arith.constant 1.000000e+00 : f32
    %10 = vector.broadcast %cst_5 : f32 to vector<16x128xf32>
    %11 = arith.addf %10, %9 : vector<16x128xf32>
    %12 = arith.divf %10, %11 : vector<16x128xf32>
    %13 = arith.mulf %6, %12 : vector<16x128xf32>
    %14 = arith.mulf %13, %7 : vector<16x128xf32>
    %c0_6 = arith.constant 0 : index
    %c0_7 = arith.constant 0 : index
    %15 = vector.load %arg5[%c0_6, %c0_7] : memref<128x128xf32, #tpu.memory_space<vmem>>, vector<128x128xf32>
    %cst_8 = arith.constant dense<0.000000e+00> : vector<16x128xf32>
    %16 = tpu.matmul %14, %15, %cst_8 {dimension_numbers = #tpu.dot_dimension_numbers<[1], [0], [0], [1], [0, 0, 1, 1], [], []>} : vector<16x128xf32>, vector<128x128xf32>, vector<16x128xf32> -> vector<16x128xf32>
    %c0_9 = arith.constant 0 : index
    %c0_10 = arith.constant 0 : index
    %17 = vector.load %arg6[%c0_9, %c0_10] : memref<1x128xf32, #tpu.memory_space<vmem>>, vector<1x128xf32>
    %18 = vector.broadcast %17 : vector<1x128xf32> to vector<16x128xf32>
    %19 = arith.addf %16, %18 : vector<16x128xf32>
    %c0_11 = arith.constant 0 : index
    %c0_12 = arith.constant 0 : index
    %20 = vector.load %arg7[%c0_11, %c0_12] : memref<16x128xf32, #tpu.memory_space<vmem>>, vector<16x128xf32>
    tpu.vector_store %arg7[%c0_11, %c0_12], %19 {strides = array<i32>} : memref<16x128xf32, #tpu.memory_space<vmem>>, vector<16x128xf32>,
    return
  }
  func.func @transform_0(%arg0: i32, %arg1: i32) -> (i32, i32) {
    %c0_i32 = arith.constant 0 : i32
    %c0_i32_0 = arith.constant 0 : i32
    return %arg0, %c0_i32 : i32, i32
  }
  func.func @transform_1(%arg0: i32, %arg1: i32) -> (i32, i32) {
    %c0_i32 = arith.constant 0 : i32
    %c0_i32_0 = arith.constant 0 : i32
    return %c0_i32, %arg1 : i32, i32
  }
  func.func @transform_2(%arg0: i32, %arg1: i32) -> (i32, i32) {
    %c0_i32 = arith.constant 0 : i32
    %c0_i32_0 = arith.constant 0 : i32
    return %c0_i32, %arg1 : i32, i32
  }
  func.func @transform_3(%arg0: i32, %arg1: i32) -> (i32, i32) {
    %c0_i32 = arith.constant 0 : i32
    %c0_i32_0 = arith.constant 0 : i32
    return %arg1, %c0_i32 : i32, i32
  }
  func.func @transform_4(%arg0: i32, %arg1: i32) -> (i32, i32) {
    %c0_i32 = arith.constant 0 : i32
    %c0_i32_0 = arith.constant 0 : i32
    %c0_i32_1 = arith.constant 0 : i32
    return %c0_i32, %c0_i32_0 : i32, i32
  }
  func.func @transform_5(%arg0: i32, %arg1: i32) -> (i32, i32) {
    %c0_i32 = arith.constant 0 : i32
    %c0_i32_0 = arith.constant 0 : i32
    return %arg0, %c0_i32 : i32, i32
  }
}

</mosaic_0001>

<bundles_post_ra>
// kernel: tpu_custom_call.1
= control target key start
LH: loop header
LB: loop body
LE: loop exit
PB: predicated region body
PF: predicated region fallthrough
CT: control target
= control target key end

     0   :  { %10 = vsyncpa [#allocation3], 0  ;;  %s546_s0 = inlined_call_operand.hbm [shape: f32[16,128], index: 0, kind: input, shape index: {}]   ;;  %s547_s1 = inlined_call_operand.hbm [shape: f32[128,256], index: 1, kind: input, shape index: {}]   ;;  %s548_s2 = inlined_call_operand.vmem [shape: f32[1,256], index: 2, kind: input, shape index: {}]   ;;  %s549_s3 = inlined_call_operand.hbm [shape: f32[128,128], index: 3, kind: input, shape index: {}]   ;;  %s550_s4 = inlined_call_operand.vmem [shape: f32[1,128], index: 4, kind: input, shape index: {}]   ;;  %s551_s5 = inlined_call_operand.hbm [shape: f32[16,128], index: 5, kind: output, shape index: {}]  }
   0x1   :  { %11 = vsyncpa [#allocation6], 0 }
   0x2   :  { %12 = vsyncpa [#allocation4], 0  ;;  %s478_s18 = smov [#allocation5]  }
   0x3   :  { %s30_s19 = sshll.u32 %s478_s18, 4  ;;  %s31_s19 = int_to_ptr.vmem [resolvable:$true] %s30_s19 }
   0x4   :  { %s400_s20 = scalar_lea.vmem %s31_s19, 4096  ;;  %p405_p1 = scmp.lt.s32.totalorder %s31_s19, %s31_s19 }
   0x5   :  { %p401_p0 = scmp.ne.s32.totalorder %s31_s19, %s400_s20  ;;  %p406_p2 = scmp.lt.s32.totalorder %s400_s20, %s400_s20 }
   0x7   :  { %p407_p3 = por %p406_p2, %p405_p1 }
   0x9   :  { %p408_p4 = pnand %p407_p3, %p401_p0 }
   0xb   :  { %411 = shalt.err (!%p408_p4)
}
   0xc   :  { %s479_s21 = smov 256   ;;  %s480_s22 = smov 16  }
   0xd   :  { %36 = dma.hbm_to_vmem [thread:$0]  %s547_s1, 4096, %s31_s19, [#allocation6], %s479_s21, %s479_s21, %s480_s22  }
   0xe   :  { %s481_s25 = smov [#allocation2]  }
   0xf   :  { %s18_s26 = sshll.u32 %s481_s25, 4  ;;  %s19_s26 = int_to_ptr.vmem [resolvable:$true] %s18_s26 }
  0x10   :  { %s420_s27 = scalar_lea.vmem %s19_s26, 256  ;;  %p425_p6 = scmp.lt.s32.totalorder %s19_s26, %s19_s26 }
  0x11   :  { %p421_p5 = scmp.ne.s32.totalorder %s19_s26, %s420_s27  ;;  %p426_p7 = scmp.lt.s32.totalorder %s420_s27, %s420_s27 }
  0x13   :  { %p427_p8 = por %p426_p7, %p425_p6 }
  0x15   :  { %p428_p9 = pnand %p427_p8, %p421_p5 }
  0x17   :  { %431 = shalt.err (!%p428_p9)
}
  0x18   :  { %s482_s28 = smov 128   ;;  %s483_s29 = smov 8  }
  0x19   :  { %24 = dma.hbm_to_vmem [thread:$0]  %s546_s0, 256, %s19_s26, [#allocation3], %s482_s28, %s482_s28, %s483_s29  }
  0x1a   :  { %s484_s1 = smov [#allocation7]  }
  0x1b   :  { %s44_s7 = sshll.u32 %s484_s1, 4  ;;  %s45_s7 = int_to_ptr.vmem [resolvable:$true] %s44_s7 }
  0x1c   :  { %s440_s8 = scalar_lea.vmem %s45_s7, 2048  ;;  %p445_p11 = scmp.lt.s32.totalorder %s45_s7, %s45_s7 }
  0x1d   :  { %p441_p10 = scmp.ne.s32.totalorder %s45_s7, %s440_s8  ;;  %p446_p12 = scmp.lt.s32.totalorder %s440_s8, %s440_s8 }
  0x1f   :  { %p447_p13 = por %p446_p12, %p445_p11 }
  0x21   :  { %p448_p0 = pnand %p447_p13, %p441_p10 }
  0x23   :  { %451 = shalt.err (!%p448_p0)
}
  0x24   :  { %50 = dma.hbm_to_vmem [thread:$0]  %s549_s3, 2048, %s45_s7, [#allocation6], %s482_s28, %s482_s28, %s483_s29  }
  0x25   :  { %472 = dma.done.wait [#allocation3], 256  }
  0x26   :  { %473 = vsyncadd [#allocation3], 4294967040 }
  0x27   :  { %474 = dma.done.wait [#allocation6], 6144  }
  0x28   :  { %475 = vsyncadd [#allocation6], 4294961152  ;;  %v485_v0 = vmov 0.0   ;;  %v95_v1 = vld [vmem:[#allocation5 + $0xf8] sm:$0xff]  ;;  %v94_v2 = vld [vmem:[#allocation5 + $0xf0] sm:$0xff]  ;;  %v98_v51 = vlaneseq  ;;  %s486_s12 = smov [#allocation8]  }
  0x29   :  { %172 = vmatprep.mubr.f32.mxu0 %v485_v0  ;;  %v93_v3 = vld [vmem:[#allocation5 + $0xe8] sm:$0xff]  ;;  %108 = vmatprep.subr.mxu0 %v95_v1  ;;  %v92_v4 = vld [vmem:[#allocation5 + $0xe0] sm:$0xff]  ;;  %v91_v5 = vld [vmem:[#allocation5 + $0xd8] sm:$0xff]  ;;  %s306_s13 = sshll.u32 %s486_s12, 4  ;;  %s307_s13 = int_to_ptr.vmem [resolvable:$true] %s306_s13 }
  0x2a   :  { %109 = vmatpush1.msra.mxu0 %v94_v2  ;;  %v90_v6 = vld [vmem:[#allocation5 + $0xd0] sm:$0xff]  ;;  %v89_v7 = vld [vmem:[#allocation5 + $0xc8] sm:$0xff]  ;;  %v88_v8 = vld [vmem:[#allocation5 + $0xc0] sm:$0xff]  ;;  %v99_v52 = vshrl.u32 %v98_v51, 7  ;;  %s452_s14 = scalar_lea.vmem %s307_s13, 256  ;;  %p457_p2 = scmp.lt.s32.totalorder %s307_s13, %s307_s13 }
  0x2b   :  { %110 = vmatprep.subr.mxu0 %v93_v3  ;;  %v87_v9 = vld [vmem:[#allocation5 + $0xb8] sm:$0xff]  ;;  %v86_v10 = vld [vmem:[#allocation5 + $0xb0] sm:$0xff]  ;;  %v85_v11 = vld [vmem:[#allocation5 + $0xa8] sm:$0xff]  ;;  %p453_p1 = scmp.ne.s32.totalorder %s307_s13, %s452_s14  ;;  %p458_p3 = scmp.lt.s32.totalorder %s452_s14, %s452_s14 }
  0x2c   :  { %111 = vmatpush1.msra.mxu0 %v92_v4  ;;  %v84_v12 = vld [vmem:[#allocation5 + $0xa0] sm:$0xff]  ;;  %v83_v13 = vld [vmem:[#allocation5 + $0x98] sm:$0xff]  ;;  %v82_v14 = vld [vmem:[#allocation5 + $0x90] sm:$0xff]  ;;  %v100_v53 = vsub.s32 0, %v99_v52  ;;  %v104_v3 = vsub.s32 1, %v99_v52 }
  0x2d   :  { %112 = vmatprep.subr.mxu0 %v91_v5  ;;  %v81_v15 = vld [vmem:[#allocation5 + $0x88] sm:$0xff]  ;;  %v80_v16 = vld [vmem:[#allocation5 + $0x80] sm:$0xff]  ;;  %v79_v17 = vld [vmem:[#allocation5 + $0x78] sm:$0xff]  ;;  %p459_p4 = por %p458_p3, %p457_p2 }
  0x2e   :  { %113 = vmatpush1.msra.mxu0 %v90_v6  ;;  %v78_v18 = vld [vmem:[#allocation5 + $0x70] sm:$0xff]  ;;  %v77_v19 = vld [vmem:[#allocation5 + $0x68] sm:$0xff]  ;;  %v76_v20 = vld [vmem:[#allocation5 + $0x60] sm:$0xff] }
  0x2f   :  { %114 = vmatprep.subr.mxu0 %v89_v7  ;;  %v75_v21 = vld [vmem:[#allocation5 + $0x58] sm:$0xff]  ;;  %v74_v22 = vld [vmem:[#allocation5 + $0x50] sm:$0xff]  ;;  %v73_v23 = vld [vmem:[#allocation5 + $0x48] sm:$0xff]  ;;  %p460_p5 = pnand %p459_p4, %p453_p1 }
  0x30   :  { %115 = vmatpush1.msra.mxu0 %v88_v8  ;;  %v72_v24 = vld [vmem:[#allocation5 + $0x40] sm:$0xff]  ;;  %v71_v25 = vld [vmem:[#allocation5 + $0x38] sm:$0xff]  ;;  %v70_v26 = vld [vmem:[#allocation5 + $0x30] sm:$0xff] }
  0x31   :  { %116 = vmatprep.subr.mxu0 %v87_v9  ;;  %v69_v27 = vld [vmem:[#allocation5 + $0x28] sm:$0xff]  ;;  %v68_v28 = vld [vmem:[#allocation5 + $0x20] sm:$0xff]  ;;  %v67_v29 = vld [vmem:[#allocation5 + $0x18] sm:$0xff] }
  0x32   :  { %117 = vmatpush1.msra.mxu0 %v86_v10  ;;  %v66_v30 = vld [vmem:[#allocation5 + $0x10] sm:$0xff]  ;;  %v65_v31 = vld [vmem:[#allocation5 + $0x8] sm:$0xff]  ;;  %v64_v32 = vld [vmem:[#allocation5] sm:$0xff] }
  0x33   :  { %118 = vmatprep.subr.mxu0 %v85_v11  ;;  %v62_v33 = vld [vmem:[#allocation2] sm:$0xff]  ;;  %v63_v34 = vld [vmem:[#allocation2 + $0x8] sm:$0xff]  ;;  %v214_v37 = vld [vmem:[#allocation7 + $0x68] sm:$0xff] }
  0x34   :  { %119 = vmatpush1.msra.mxu0 %v84_v12  ;;  %v216_v35 = vld [vmem:[#allocation7 + $0x78] sm:$0xff]  ;;  %v215_v36 = vld [vmem:[#allocation7 + $0x70] sm:$0xff]  ;;  %v213_v38 = vld [vmem:[#allocation7 + $0x60] sm:$0xff] }
  0x35   :  { %120 = vmatprep.subr.mxu0 %v83_v13  ;;  %340 = vmatprep.subr.mxu1 %v216_v35  ;;  %v212_v39 = vld [vmem:[#allocation7 + $0x58] sm:$0xff]  ;;  %v211_v40 = vld [vmem:[#allocation7 + $0x50] sm:$0xff]  ;;  %v210_v41 = vld [vmem:[#allocation7 + $0x48] sm:$0xff] }
  0x36   :  { %121 = vmatpush1.msra.mxu0 %v82_v14  ;;  %341 = vmatpush3.msra.mxu1 %v216_v35  ;;  %v209_v42 = vld [vmem:[#allocation7 + $0x40] sm:$0xff]  ;;  %v208_v43 = vld [vmem:[#allocation7 + $0x38] sm:$0xff]  ;;  %v207_v44 = vld [vmem:[#allocation7 + $0x30] sm:$0xff] }
  0x37   :  { %122 = vmatprep.subr.mxu0 %v81_v15  ;;  %342 = vmatprep.subr.mxu1 %v215_v36  ;;  %v206_v45 = vld [vmem:[#allocation7 + $0x28] sm:$0xff]  ;;  %v205_v46 = vld [vmem:[#allocation7 + $0x20] sm:$0xff]  ;;  %v204_v47 = vld [vmem:[#allocation7 + $0x18] sm:$0xff] }
  0x38   :  { %123 = vmatpush1.msra.mxu0 %v80_v16  ;;  %343 = vmatpush3.msra.mxu1 %v215_v36  ;;  %v203_v48 = vld [vmem:[#allocation7 + $0x10] sm:$0xff]  ;;  %v202_v49 = vld [vmem:[#allocation7 + $0x8] sm:$0xff]  ;;  %v201_v50 = vld [vmem:[#allocation7] sm:$0xff] }
  0x39   :  { %124 = vmatprep.subr.mxu0 %v79_v17  ;;  %344 = vmatprep.subr.mxu1 %v214_v37  ;;  %v96_v54 = vld [vmem:[%s548_s2] sm:$0x3] }
  0x3a   :  { %125 = vmatpush1.msra.mxu0 %v78_v18  ;;  %345 = vmatpush3.msra.mxu1 %v214_v37  ;;  %v101_v55 = vrot.slane %v96_v54, %v100_v53  ;;  %v105_v4 = vrot.slane %v96_v54, %v104_v3  ;;  %v321_v14 = vld [vmem:[%s550_s4] ss:$0 sm:$0xff] }
  0x3b   :  { %126 = vmatprep.subr.mxu0 %v77_v19  ;;  %346 = vmatprep.subr.mxu1 %v213_v38 }
  0x3c   :  { %127 = vmatpush1.msra.mxu0 %v76_v20  ;;  %347 = vmatpush3.msra.mxu1 %v213_v38 }
  0x3d   :  { %128 = vmatprep.subr.mxu0 %v75_v21  ;;  %348 = vmatprep.subr.mxu1 %v212_v39 }
  0x3e   :  { %129 = vmatpush1.msra.mxu0 %v74_v22  ;;  %349 = vmatpush3.msra.mxu1 %v212_v39 }
  0x3f   :  { %130 = vmatprep.subr.mxu0 %v73_v23  ;;  %350 = vmatprep.subr.mxu1 %v211_v40 }
  0x40   :  { %131 = vmatpush1.msra.mxu0 %v72_v24  ;;  %351 = vmatpush3.msra.mxu1 %v211_v40 }
  0x41   :  { %132 = vmatprep.subr.mxu0 %v71_v25  ;;  %352 = vmatprep.subr.mxu1 %v210_v41 }
  0x42   :  { %133 = vmatpush1.msra.mxu0 %v70_v26  ;;  %353 = vmatpush3.msra.mxu1 %v210_v41 }
  0x43   :  { %134 = vmatprep.subr.mxu0 %v69_v27  ;;  %354 = vmatprep.subr.mxu1 %v209_v42 }
  0x44   :  { %135 = vmatpush1.msra.mxu0 %v68_v28  ;;  %355 = vmatpush3.msra.mxu1 %v209_v42 }
  0x45   :  { %136 = vmatprep.subr.mxu0 %v67_v29  ;;  %356 = vmatprep.subr.mxu1 %v208_v43 }
  0x46   :  { %137 = vmatpush1.msra.mxu0 %v66_v30  ;;  %357 = vmatpush3.msra.mxu1 %v208_v43 }
  0x47   :  { %138 = vmatprep.subr.mxu0 %v65_v31  ;;  %358 = vmatprep.subr.mxu1 %v207_v44 }
  0x48   :  { %139 = vmatpush1.msra.mxu0 %v64_v32  ;;  %359 = vmatpush3.msra.mxu1 %v207_v44 }
  0x49   :  { %173 = vmatmul.mubr.f32.vlgmr.msra.gmra.mxu0 %v62_v33  ;;  %360 = vmatprep.subr.mxu1 %v206_v45 }
  0x4a   :  { %178 = vmatprep.mubr.f32.mxu0 %v485_v0  ;;  %361 = vmatpush3.msra.mxu1 %v206_v45 }
  0x4b   :  { %362 = vmatprep.subr.mxu1 %v205_v46 }
  0x4c   :  { %363 = vmatpush3.msra.mxu1 %v205_v46 }
  0x4d   :  { %179 = vmatmul.mubr.f32.gmra.mxu0 %v63_v34  ;;  %364 = vmatprep.subr.mxu1 %v204_v47 }
  0x4e   :  { %365 = vmatpush3.msra.mxu1 %v204_v47 }
  0x4f   :  { %366 = vmatprep.subr.mxu1 %v203_v48 }
  0x50   :  { %367 = vmatpush3.msra.mxu1 %v203_v48 }
  0x51   :  { %368 = vmatprep.subr.mxu1 %v202_v49 }
  0x52   :  { %369 = vmatpush3.msra.mxu1 %v202_v49 }
  0x53   :  { %370 = vmatprep.subr.mxu1 %v201_v50 }
  0x54   :  { %371 = vmatpush3.msra.mxu1 %v201_v50 }
 0x109   :  { %v174_v56 = vpop.f32.mrf.mxu0 }
 0x10a   :  { %v175_v57 = vadd.f32 %v174_v56, %v101_v55 }
 0x10b   :  { %v176_v58 = vpop.f32.mrf.mxu0 }
 0x10c   :  { %v319_v59 = vmul.f32 -1.442695, %v175_v57  ;;  %v177_v6 = vadd.f32 %v176_v58, %v105_v4 }
 0x10d   :  { %v180_v60 = vpop.f32.mrf.mxu0 }
 0x10e   :  { %384 = vpow2.f32 %v319_v59  ;;  %v181_v61 = vadd.f32 %v180_v60, %v101_v55 }
 0x10f   :  { %v182_v8 = vpop.f32.mrf.mxu0 }
 0x110   :  { %v320_v62 = vmul.f32 -1.442695, %v181_v61  ;;  %v183_v12 = vadd.f32 %v182_v8, %v105_v4 }
 0x112   :  { %386 = vpow2.f32 %v320_v62 }
 0x11b   :  { %v385_v63 = vpop.eup %384 }
 0x11c   :  { %v191_v0 = vadd.f32 1.0, %v385_v63 }
 0x11e   :  { %388 = vrcp.f32 %v191_v0 }
 0x11f   :  { %v387_v1 = vpop.eup %386 }
 0x120   :  { %v192_v2 = vadd.f32 1.0, %v387_v1 }
 0x122   :  { %390 = vrcp.f32 %v192_v2 }
 0x12b   :  { %v389_v5 = vpop.eup %388 }
 0x12c   :  { %v197_v7 = vmul.f32 %v389_v5, %v175_v57 }
 0x12e   :  { %v199_v9 = vmul.f32 %v197_v7, %v177_v6 }
 0x12f   :  { %v391_v10 = vpop.eup %390 }
 0x130   :  { %v198_v11 = vmul.f32 %v391_v10, %v181_v61  ;;  %372 = vmatprep.mubr.f32.mxu1 %v199_v9 }
 0x132   :  { %v200_v13 = vmul.f32 %v198_v11, %v183_v12 }
 0x134   :  { %373 = vmatmul.mubr.f32.vlgmr.msra.gmra.mxu1 %v200_v13 }
 0x1f4   :  { %v374_v15 = vpop.f32.mrf.mxu1 }
 0x1f5   :  { %v296_v16 = vadd.f32 %v374_v15, %v321_v14 }
 0x1f6   :  { %v290_v17 = vpop.f32.mrf.mxu1 }
 0x1f7   :  { %300 = vst [vmem:[#allocation8 + $0x8] sm:$0xff] %v296_v16  ;;  %v291_v18 = vadd.f32 %v321_v14, %v290_v17 }
 0x1f9   :  { %299 = vst [vmem:[#allocation8] sm:$0xff] %v291_v18 }
 0x1fa   :  { %463 = shalt.err (!%p460_p5)
}
 0x1fb   :  { %312 = dma.vmem_to_hbm [thread:$0]  %s307_s13, 256, %s551_s5, [#allocation4], %s482_s28, %s482_s28, %s483_s29  }
 0x1fc   :  { %476 = dma.done.wait [#allocation4], 256  }
 0x1fd   :  { %477 = vsyncadd [#allocation4], 4294967040 }
 0x1fe   :  { %316 = vsyncpa [#allocation3], 1 }
 0x1ff   :  { %317 = vsyncpa [#allocation6], 1 }
 0x200   :  { %318 = vsyncpa [#allocation4], 1 }

</bundles_post_ra>
